<compile_context>
chip_gen: v6e
topology: v6e:2x2x1
jax: 0.10.0
libtpu: 0.0.40
codegen_flags: <defaults>
</compile_context>

<pallas_src>
import jax
import jax.numpy as jnp
import numpy as np
from jax.experimental import pallas as pl
from jax.experimental.pallas import tpu as pltpu


# ----------------------------------------------------------------------------
# Kernel
# ----------------------------------------------------------------------------
def _res_block_kernel(x_ref, w1_ref, b1_ref, w2_ref, b2_ref, o_ref):
    """One grid step = one batch element (fully fused ResBlock).

    x_ref : (1, H, W*C)      input image; row-major (W, C) flattened on lanes
    w1_ref: (3, W*C, W*HC)   banded conv1 weights (BN1 scale folded in)
    b1_ref: (1, W*HC)        BN1 shift, tiled across W
    w2_ref: (3, W*HC, W*C)   banded conv2 weights (BN2 scale folded in)
    b2_ref: (1, W*C)         BN2 shift, tiled across W
    o_ref : (1, H, W*C)      output image, same layout as x_ref
    """
    H = x_ref.shape[1]
    mxu_dtype = w1_ref.dtype

    # Row-shift matrices implementing SAME padding along H:
    #   (s_dn @ a)[i] = a[i-1] (zero row on top), (s_up @ a)[i] = a[i+1].
    # Built from 2-D iotas so the kernel uses only dots + elementwise ops.
    ri = jax.lax.broadcasted_iota(jnp.int32, (H, H), 0)
    ci = jax.lax.broadcasted_iota(jnp.int32, (H, H), 1)
    s_dn = (ci == ri - 1).astype(jnp.float32)
    s_up = (ci == ri + 1).astype(jnp.float32)

    def conv_bn(inp, w_ref, b_ref):
        # inp: (H, W*Cin) f32.  Returns f32 (H, W*Cout) = SAME 3x3 conv
        # (with BN scale already folded into w_ref) + BN shift.
        inp_dn = jnp.dot(s_dn, inp, preferred_element_type=jnp.float32)
        inp_up = jnp.dot(s_up, inp, preferred_element_type=jnp.float32)
        acc = b_ref[...].astype(jnp.float32)            # shift seeds the acc
        acc = acc + jnp.dot(inp_dn.astype(mxu_dtype), w_ref[0],
                            preferred_element_type=jnp.float32)
        acc = acc + jnp.dot(inp.astype(mxu_dtype), w_ref[1],
                            preferred_element_type=jnp.float32)
        acc = acc + jnp.dot(inp_up.astype(mxu_dtype), w_ref[2],
                            preferred_element_type=jnp.float32)
        return acc

    x = x_ref[0].astype(jnp.float32)                     # (H, W*C)
    # conv1 + bn1 + relu — intermediate h stays entirely in VMEM/registers.
    h = jnp.maximum(conv_bn(x, w1_ref, b1_ref), 0.0)     # (H, W*HC), 128 lanes
    # conv2 + bn2 + residual + relu (residual layout matches x exactly).
    y = jnp.maximum(conv_bn(h, w2_ref, b2_ref) + x, 0.0)  # (H, W*C)
    o_ref[0] = y.astype(o_ref.dtype)


# ----------------------------------------------------------------------------
# Wrapper-side weight preparation
# ----------------------------------------------------------------------------
def fold_bn(gamma, beta, mean, var, eps=1e-5):
    scale = gamma / jnp.sqrt(var + eps)
    shift = beta - mean * scale
    return scale, shift


def _build_banded_weight(w, bn_scale, width, dtype):
    """w: (3,3,Cin,Cout) HWIO conv weight; bn_scale: (Cout,) folded BN scale.

    Returns B of shape (3, width*Cin, width*Cout) with
      B[dy, j_in*Cin + c, j_out*Cout + o] = (w * scale)[dy, j_in - j_out + 1, c, o]
    for |j_in - j_out| <= 1, else 0.  A SAME 3x3 conv row then becomes
    row_slab(H, width*Cin) @ B[dy] — one wide MXU matmul per kernel row, with
    column padding encoded in the band structure.
    """
    kh, kw, cin, cout = w.shape
    wf = (w * bn_scale[None, None, None, :]).astype(jnp.float32)
    j_in = jnp.arange(width)[:, None, None]
    dx = jnp.arange(kw)[None, :, None]
    j_out = jnp.arange(width)[None, None, :]
    sel = (j_in == j_out + dx - 1).astype(jnp.float32)       # (width, kw, width)
    big = jnp.einsum("pxj,yxco->ypcjo", sel, wf)              # (kh,width,cin,width,cout)
    return big.reshape(kh, width * cin, width * cout).astype(dtype)


def res_block_forward(x_nchw, params, *, mxu_dtype=jnp.float32):
    """Pallas ResBlock forward.  x_nchw: (N, C, H, W).

    mxu_dtype=jnp.bfloat16 is recommended on v5e/v6e/v7x at production channel
    counts (f32 accumulation is kept either way); default f32 keeps the small
    verification case bit-tight.
    """
    N, C, H, W = x_nchw.shape
    HC = params["w1"].shape[-1]

    s1, b1 = fold_bn(*params["bn1"])
    s2, b2 = fold_bn(*params["bn2"])

    w1b = _build_banded_weight(params["w1"], s1, W, mxu_dtype)   # (3, W*C,  W*HC)
    w2b = _build_banded_weight(params["w2"], s2, W, mxu_dtype)   # (3, W*HC, W*C)
    b1_row = jnp.tile(b1.astype(jnp.float32), W)[None, :]        # (1, W*HC)
    b2_row = jnp.tile(b2.astype(jnp.float32), W)[None, :]        # (1, W*C)

    # NCHW -> NHWC -> flatten each row's (W, C) onto the lane axis (no padding).
    x_flat = jnp.transpose(x_nchw, (0, 2, 3, 1)).reshape(N, H, W * C)

    wbytes = jnp.dtype(mxu_dtype).itemsize
    flops = 4 * 9 * H * W * C * HC * N                    # 2 convs, 2 flops/MAC
    bytes_accessed = ((x_flat.size + N * H * W * C) * 4
                      + (w1b.size + w2b.size) * wbytes
                      + (b1_row.size + b2_row.size) * 4)

    out_flat = pl.pallas_call(
        _res_block_kernel,
        out_shape=jax.ShapeDtypeStruct((N, H, W * C), x_nchw.dtype),
        grid=(N,),
        in_specs=[
            pl.BlockSpec((1, H, W * C), lambda n: (n, 0, 0)),
            pl.BlockSpec((3, W * C, W * HC), lambda n: (0, 0, 0)),
            pl.BlockSpec((1, W * HC), lambda n: (0, 0)),
            pl.BlockSpec((3, W * HC, W * C), lambda n: (0, 0, 0)),
            pl.BlockSpec((1, W * C), lambda n: (0, 0)),
        ],
        out_specs=pl.BlockSpec((1, H, W * C), lambda n: (n, 0, 0)),
        compiler_params=pltpu.CompilerParams(
            dimension_semantics=("parallel",)),
        cost_estimate=pl.CostEstimate(
            flops=flops, transcendentals=0, bytes_accessed=bytes_accessed),
    )(x_flat, w1b, b1_row, w2b, b2_row)

    # (N, H, W*C) -> (N, H, W, C) -> NCHW
    return jnp.transpose(out_flat.reshape(N, H, W, C), (0, 3, 1, 2))


# ----------------------------------------------------------------------------
# Pure-JAX reference (eval-mode BN) for verification
# ----------------------------------------------------------------------------
def reference_forward(x_nchw, params):
    def conv(x, w_oihw):
        return jax.lax.conv_general_dilated(
            x, w_oihw, window_strides=(1, 1), padding="SAME",
            dimension_numbers=("NCHW", "OIHW", "NCHW"))

    def bn(x, gamma, beta, mean, var, eps=1e-5):
        g = gamma.reshape(1, -1, 1, 1)
        b = beta.reshape(1, -1, 1, 1)
        m = mean.reshape(1, -1, 1, 1)
        v = var.reshape(1, -1, 1, 1)
        return (x - m) / jnp.sqrt(v + eps) * g + b

    w1 = jnp.transpose(params["w1"], (3, 2, 0, 1))   # HWIO -> OIHW
    w2 = jnp.transpose(params["w2"], (3, 2, 0, 1))
    h = jax.nn.relu(bn(conv(x_nchw, w1), *params["bn1"]))
    y = jax.nn.relu(x_nchw + bn(conv(h, w2), *params["bn2"]))
    return y


if __name__ == "__main__":
    N, C, Hc, H, W = 2, 4, 8, 16, 16   # batch, channels, hidden_channels, H, W

    key = jax.random.PRNGKey(0)
    ks = jax.random.split(key, 12)

    params = {
        # conv weights stored as (3, 3, Cin, Cout)
        "w1": jax.random.normal(ks[0], (3, 3, C, Hc), jnp.float32) * 0.1,
        "w2": jax.random.normal(ks[1], (3, 3, Hc, C), jnp.float32) * 0.1,
        # bn params: (gamma, beta, running_mean, running_var)
        "bn1": (
            jax.random.uniform(ks[2], (Hc,), jnp.float32, 0.5, 1.5),
            jax.random.normal(ks[3], (Hc,), jnp.float32) * 0.1,
            jax.random.normal(ks[4], (Hc,), jnp.float32) * 0.1,
            jax.random.uniform(ks[5], (Hc,), jnp.float32, 0.5, 1.5),
        ),
        "bn2": (
            jax.random.uniform(ks[6], (C,), jnp.float32, 0.5, 1.5),
            jax.random.normal(ks[7], (C,), jnp.float32) * 0.1,
            jax.random.normal(ks[8], (C,), jnp.float32) * 0.1,
            jax.random.uniform(ks[9], (C,), jnp.float32, 0.5, 1.5),
        ),
    }

    x = jax.random.normal(ks[10], (N, C, H, W), jnp.float32)

    fwd = jax.jit(res_block_forward)
    out = jax.block_until_ready(fwd(x, params))
    ref = jax.block_until_ready(reference_forward(x, params))

    assert out.shape == (N, C, H, W)
    np.testing.assert_allclose(np.asarray(out), np.asarray(ref),
                               rtol=1e-4, atol=1e-4)
    print("KERNEL_OK")
</pallas_src>

<mosaic_0001>
module attributes {stable_mosaic.version = 11 : i64} {
  func.func @_res_block_kernel(%arg0: i32, %arg1: memref<1x16x64xf32, #tpu.memory_space<vmem>>, %arg2: memref<3x64x128xf32, #tpu.memory_space<vmem>>, %arg3: memref<1x128xf32, #tpu.memory_space<vmem>>, %arg4: memref<3x128x64xf32, #tpu.memory_space<vmem>>, %arg5: memref<1x64xf32, #tpu.memory_space<vmem>>, %arg6: memref<1x16x64xf32, #tpu.memory_space<vmem>>) attributes {dimension_semantics = [#tpu.dimension_semantics<parallel>], iteration_bounds = array<i64: 2>, scalar_prefetch = 0 : i64, scratch_operands = 0 : i64, tpu.core_type = #tpu.core_type<tc>, window_params = [{transform_indices = @transform_0, window_bounds = array<i64: 1, 16, 64>}, {pipeline_mode = #tpu.pipeline_mode<synchronous>, transform_indices = @transform_1, window_bounds = array<i64: 3, 64, 128>}, {pipeline_mode = #tpu.pipeline_mode<synchronous>, transform_indices = @transform_2, window_bounds = array<i64: 1, 128>}, {pipeline_mode = #tpu.pipeline_mode<synchronous>, transform_indices = @transform_3, window_bounds = array<i64: 3, 128, 64>}, {pipeline_mode = #tpu.pipeline_mode<synchronous>, transform_indices = @transform_4, window_bounds = array<i64: 1, 64>}, {transform_indices = @transform_5, window_bounds = array<i64: 1, 16, 64>}]} {
    %0 = tpu.iota {dimensions = array<i32: 0>} : vector<16x16xi32>
    %1 = tpu.iota {dimensions = array<i32: 1>} : vector<16x16xi32>
    %c1_i32 = arith.constant 1 : i32
    %2 = vector.broadcast %c1_i32 : i32 to vector<16x16xi32>
    %3 = arith.subi %0, %2 : vector<16x16xi32>
    %4 = arith.cmpi eq, %1, %3 : vector<16x16xi32>
    %5 = arith.extui %4 : vector<16x16xi1> to vector<16x16xi32>
    %6 = arith.sitofp %5 : vector<16x16xi32> to vector<16x16xf32>
    %c1_i32_0 = arith.constant 1 : i32
    %7 = vector.broadcast %c1_i32_0 : i32 to vector<16x16xi32>
    %8 = arith.addi %0, %7 : vector<16x16xi32>
    %9 = arith.cmpi eq, %1, %8 : vector<16x16xi32>
    %10 = arith.extui %9 : vector<16x16xi1> to vector<16x16xi32>
    %11 = arith.sitofp %10 : vector<16x16xi32> to vector<16x16xf32>
    %c0 = arith.constant 0 : index
    %c0_1 = arith.constant 0 : index
    %c0_2 = arith.constant 0 : index
    %12 = vector.load %arg1[%c0, %c0_1, %c0_2] : memref<1x16x64xf32, #tpu.memory_space<vmem>>, vector<1x16x64xf32>
    %13 = vector.shape_cast %12 : vector<1x16x64xf32> to vector<16x64xf32>
    %cst = arith.constant dense<0.000000e+00> : vector<16x64xf32>
    %14 = tpu.matmul %6, %13, %cst {dimension_numbers = #tpu.dot_dimension_numbers<[1], [0], [0], [1], [0, 0, 1, 1], [], []>} : vector<16x16xf32>, vector<16x64xf32>, vector<16x64xf32> -> vector<16x64xf32>
    %cst_3 = arith.constant dense<0.000000e+00> : vector<16x64xf32>
    %15 = tpu.matmul %11, %13, %cst_3 {dimension_numbers = #tpu.dot_dimension_numbers<[1], [0], [0], [1], [0, 0, 1, 1], [], []>} : vector<16x16xf32>, vector<16x64xf32>, vector<16x64xf32> -> vector<16x64xf32>
    %c0_4 = arith.constant 0 : index
    %c0_5 = arith.constant 0 : index
    %16 = vector.load %arg3[%c0_4, %c0_5] : memref<1x128xf32, #tpu.memory_space<vmem>>, vector<1x128xf32>
    %c0_6 = arith.constant 0 : index
    %c0_7 = arith.constant 0 : index
    %c0_8 = arith.constant 0 : index
    %17 = vector.load %arg2[%c0_6, %c0_7, %c0_8] : memref<3x64x128xf32, #tpu.memory_space<vmem>>, vector<1x64x128xf32>
    %18 = vector.shape_cast %17 : vector<1x64x128xf32> to vector<64x128xf32>
    %cst_9 = arith.constant dense<0.000000e+00> : vector<16x128xf32>
    %19 = tpu.matmul %14, %18, %cst_9 {dimension_numbers = #tpu.dot_dimension_numbers<[1], [0], [0], [1], [0, 0, 1, 1], [], []>} : vector<16x64xf32>, vector<64x128xf32>, vector<16x128xf32> -> vector<16x128xf32>
    %20 = vector.broadcast %16 : vector<1x128xf32> to vector<16x128xf32>
    %21 = arith.addf %20, %19 : vector<16x128xf32>
    %c1 = arith.constant 1 : index
    %c0_10 = arith.constant 0 : index
    %c0_11 = arith.constant 0 : index
    %22 = vector.load %arg2[%c1, %c0_10, %c0_11] : memref<3x64x128xf32, #tpu.memory_space<vmem>>, vector<1x64x128xf32>
    %23 = vector.shape_cast %22 : vector<1x64x128xf32> to vector<64x128xf32>
    %cst_12 = arith.constant dense<0.000000e+00> : vector<16x128xf32>
    %24 = tpu.matmul %13, %23, %cst_12 {dimension_numbers = #tpu.dot_dimension_numbers<[1], [0], [0], [1], [0, 0, 1, 1], [], []>} : vector<16x64xf32>, vector<64x128xf32>, vector<16x128xf32> -> vector<16x128xf32>
    %25 = arith.addf %21, %24 : vector<16x128xf32>
    %c2 = arith.constant 2 : index
    %c0_13 = arith.constant 0 : index
    %c0_14 = arith.constant 0 : index
    %26 = vector.load %arg2[%c2, %c0_13, %c0_14] : memref<3x64x128xf32, #tpu.memory_space<vmem>>, vector<1x64x128xf32>
    %27 = vector.shape_cast %26 : vector<1x64x128xf32> to vector<64x128xf32>
    %cst_15 = arith.constant dense<0.000000e+00> : vector<16x128xf32>
    %28 = tpu.matmul %15, %27, %cst_15 {dimension_numbers = #tpu.dot_dimension_numbers<[1], [0], [0], [1], [0, 0, 1, 1], [], []>} : vector<16x64xf32>, vector<64x128xf32>, vector<16x128xf32> -> vector<16x128xf32>
    %29 = arith.addf %25, %28 : vector<16x128xf32>
    %cst_16 = arith.constant 0.000000e+00 : f32
    %30 = vector.broadcast %cst_16 : f32 to vector<16x128xf32>
    %31 = arith.maximumf %29, %30 : vector<16x128xf32>
    %cst_17 = arith.constant dense<0.000000e+00> : vector<16x128xf32>
    %32 = tpu.matmul %6, %31, %cst_17 {dimension_numbers = #tpu.dot_dimension_numbers<[1], [0], [0], [1], [0, 0, 1, 1], [], []>} : vector<16x16xf32>, vector<16x128xf32>, vector<16x128xf32> -> vector<16x128xf32>
    %cst_18 = arith.constant dense<0.000000e+00> : vector<16x128xf32>
    %33 = tpu.matmul %11, %31, %cst_18 {dimension_numbers = #tpu.dot_dimension_numbers<[1], [0], [0], [1], [0, 0, 1, 1], [], []>} : vector<16x16xf32>, vector<16x128xf32>, vector<16x128xf32> -> vector<16x128xf32>
    %c0_19 = arith.constant 0 : index
    %c0_20 = arith.constant 0 : index
    %34 = vector.load %arg5[%c0_19, %c0_20] : memref<1x64xf32, #tpu.memory_space<vmem>>, vector<1x64xf32>
    %c0_21 = arith.constant 0 : index
    %c0_22 = arith.constant 0 : index
    %c0_23 = arith.constant 0 : index
    %35 = vector.load %arg4[%c0_21, %c0_22, %c0_23] : memref<3x128x64xf32, #tpu.memory_space<vmem>>, vector<1x128x64xf32>
    %36 = vector.shape_cast %35 : vector<1x128x64xf32> to vector<128x64xf32>
    %cst_24 = arith.constant dense<0.000000e+00> : vector<16x64xf32>
    %37 = tpu.matmul %32, %36, %cst_24 {dimension_numbers = #tpu.dot_dimension_numbers<[1], [0], [0], [1], [0, 0, 1, 1], [], []>} : vector<16x128xf32>, vector<128x64xf32>, vector<16x64xf32> -> vector<16x64xf32>
    %38 = vector.broadcast %34 : vector<1x64xf32> to vector<16x64xf32>
    %39 = arith.addf %38, %37 : vector<16x64xf32>
    %c1_25 = arith.constant 1 : index
    %c0_26 = arith.constant 0 : index
    %c0_27 = arith.constant 0 : index
    %40 = vector.load %arg4[%c1_25, %c0_26, %c0_27] : memref<3x128x64xf32, #tpu.memory_space<vmem>>, vector<1x128x64xf32>
    %41 = vector.shape_cast %40 : vector<1x128x64xf32> to vector<128x64xf32>
    %cst_28 = arith.constant dense<0.000000e+00> : vector<16x64xf32>
    %42 = tpu.matmul %31, %41, %cst_28 {dimension_numbers = #tpu.dot_dimension_numbers<[1], [0], [0], [1], [0, 0, 1, 1], [], []>} : vector<16x128xf32>, vector<128x64xf32>, vector<16x64xf32> -> vector<16x64xf32>
    %43 = arith.addf %39, %42 : vector<16x64xf32>
    %c2_29 = arith.constant 2 : index
    %c0_30 = arith.constant 0 : index
    %c0_31 = arith.constant 0 : index
    %44 = vector.load %arg4[%c2_29, %c0_30, %c0_31] : memref<3x128x64xf32, #tpu.memory_space<vmem>>, vector<1x128x64xf32>
    %45 = vector.shape_cast %44 : vector<1x128x64xf32> to vector<128x64xf32>
    %cst_32 = arith.constant dense<0.000000e+00> : vector<16x64xf32>
    %46 = tpu.matmul %33, %45, %cst_32 {dimension_numbers = #tpu.dot_dimension_numbers<[1], [0], [0], [1], [0, 0, 1, 1], [], []>} : vector<16x128xf32>, vector<128x64xf32>, vector<16x64xf32> -> vector<16x64xf32>
    %47 = arith.addf %43, %46 : vector<16x64xf32>
    %48 = arith.addf %47, %13 : vector<16x64xf32>
    %cst_33 = arith.constant 0.000000e+00 : f32
    %49 = vector.broadcast %cst_33 : f32 to vector<16x64xf32>
    %50 = arith.maximumf %48, %49 : vector<16x64xf32>
    %c0_34 = arith.constant 0 : index
    %c0_35 = arith.constant 0 : index
    %c0_36 = arith.constant 0 : index
    %51 = vector.load %arg6[%c0_34, %c0_35, %c0_36] : memref<1x16x64xf32, #tpu.memory_space<vmem>>, vector<1x16x64xf32>
    %52 = vector.shape_cast %51 : vector<1x16x64xf32> to vector<16x64xf32>
    %53 = vector.shape_cast %50 : vector<16x64xf32> to vector<1x16x64xf32>
    tpu.vector_store %arg6[%c0_34, %c0_35, %c0_36], %53 {strides = array<i32>} : memref<1x16x64xf32, #tpu.memory_space<vmem>>, vector<1x16x64xf32>,
    return
  }
  func.func @transform_0(%arg0: i32) -> (i32, i32, i32) {
    %c0_i32 = arith.constant 0 : i32
    %c0_i32_0 = arith.constant 0 : i32
    %c0_i32_1 = arith.constant 0 : i32
    return %arg0, %c0_i32, %c0_i32_0 : i32, i32, i32
  }
  func.func @transform_1(%arg0: i32) -> (i32, i32, i32) {
    %c0_i32 = arith.constant 0 : i32
    %c0_i32_0 = arith.constant 0 : i32
    %c0_i32_1 = arith.constant 0 : i32
    %c0_i32_2 = arith.constant 0 : i32
    return %c0_i32, %c0_i32_0, %c0_i32_1 : i32, i32, i32
  }
  func.func @transform_2(%arg0: i32) -> (i32, i32) {
    %c0_i32 = arith.constant 0 : i32
    %c0_i32_0 = arith.constant 0 : i32
    %c0_i32_1 = arith.constant 0 : i32
    return %c0_i32, %c0_i32_0 : i32, i32
  }
  func.func @transform_3(%arg0: i32) -> (i32, i32, i32) {
    %c0_i32 = arith.constant 0 : i32
    %c0_i32_0 = arith.constant 0 : i32
    %c0_i32_1 = arith.constant 0 : i32
    %c0_i32_2 = arith.constant 0 : i32
    return %c0_i32, %c0_i32_0, %c0_i32_1 : i32, i32, i32
  }
  func.func @transform_4(%arg0: i32) -> (i32, i32) {
    %c0_i32 = arith.constant 0 : i32
    %c0_i32_0 = arith.constant 0 : i32
    %c0_i32_1 = arith.constant 0 : i32
    return %c0_i32, %c0_i32_0 : i32, i32
  }
  func.func @transform_5(%arg0: i32) -> (i32, i32, i32) {
    %c0_i32 = arith.constant 0 : i32
    %c0_i32_0 = arith.constant 0 : i32
    %c0_i32_1 = arith.constant 0 : i32
    return %arg0, %c0_i32, %c0_i32_0 : i32, i32, i32
  }
}

</mosaic_0001>

<bundles_post_ra>
// kernel: tile.13
= control target key start
LH: loop header
LB: loop body
LE: loop exit
PB: predicated region body
PF: predicated region fallthrough
CT: control target
= control target key end

     0   :  { %s28_s0 = inlined_call_operand.vmem [shape: f32[8], index: 0, kind: input, shape index: {}]   ;;  %s29_s1 = inlined_call_operand.vmem [shape: f32[16,8], index: 1, kind: output, shape index: {}]  }
   0x1   :  { %v4_v0 = vld [vmem:[%s28_s0] ss:$0 sm:$0xff] }
   0x2   :  { %5 = vst [vmem:[%s29_s1] sm:$0xff] %v4_v0  ;;  %8 = vst [vmem:[%s29_s1 + $0x8] sm:$0xff] %v4_v0 }

// kernel: tile.14
= control target key start
LH: loop header
LB: loop body
LE: loop exit
PB: predicated region body
PF: predicated region fallthrough
CT: control target
= control target key end

     0   :  { %s133_s10 = smov 120   ;;  %s134_s11 = smov 104   ;;  %vm3_vm0 = vcmask 64512   ;;  %vm9_vm1 = vcmask 1048512   ;;  %vm15_vm2 = vcmask 982912   ;;  %vm21_vm3 = vcmask 917312   ;;  %s209_s0 = inlined_call_operand.vmem [shape: f32[16,8], index: 0, kind: input, shape index: {}]   ;;  %s210_s1 = inlined_call_operand.vmem [shape: f32[1,128], index: 1, kind: output, shape index: {}]  }
   0x1   :  { %v103_v0 = vld [vmem:[%s209_s0 + $0xf] sm:$0x1]   ;;  %v105_v1 = vld [vmem:[%s209_s0 + $0xd] sm:$0x1]   ;;  %v104_v2 = vld [vmem:[%s209_s0 + $0xe] sm:$0x1]  }
   0x2   :  { %7 = vrot.lane.b32.xlu0 %v103_v0, %s133_s10  ;;  %19 = vrot.lane.b32.xlu1 %v105_v1, %s134_s11  ;;  %v106_v3 = vld [vmem:[%s209_s0 + $0xc] sm:$0x1]   ;;  %s135_s16 = smov 112   ;;  %s136_s17 = smov 96   ;;  %v107_v4 = vld [vmem:[%s209_s0 + $0xb] sm:$0x1]  }
   0x3   :  { %v108_v5 = vld [vmem:[%s209_s0 + $0xa] sm:$0x1]   ;;  %v2_v6 = vld [vmem:[%s209_s0] sm:$0x1]   ;;  %s137_s24 = smov 88   ;;  %s138_s25 = smov 80  }
   0x4   :  { %4 = vst.msk [vmem:[#allocation0] sm:$0x1] %vm3_vm0, %v2_v6   ;;  %v109_v7 = vld [vmem:[%s209_s0 + $0x9] sm:$0x1]   ;;  %v110_v8 = vld [vmem:[%s209_s0 + $0x8] sm:$0x1]  }
   0x5   :  { %s139_s30 = smov 72   ;;  %s140_s2 = smov 64   ;;  %v111_v9 = vld [vmem:[%s209_s0 + $0x7] sm:$0x1]   ;;  %v112_v10 = vld [vmem:[%s209_s0 + $0x6] sm:$0x1]  }
   0x6   :  { %13 = vrot.lane.b32.xlu0 %v104_v2, %s135_s16  ;;  %25 = vrot.lane.b32.xlu1 %v106_v3, %s136_s17  ;;  %s141_s7 = smov 56   ;;  %s142_s8 = smov 48   ;;  %v113_v11 = vld [vmem:[%s209_s0 + $0x5] sm:$0x1]   ;;  %v114_v12 = vld [vmem:[%s209_s0 + $0x4] sm:$0x1]  }
   0x7   :  { %s143_s13 = smov 40   ;;  %s144_s14 = smov 32   ;;  %v115_v13 = vld [vmem:[%s209_s0 + $0x3] sm:$0x1]   ;;  %v116_v14 = vld [vmem:[%s209_s0 + $0x2] sm:$0x1]  }
   0x8   :  { %s145_s19 = smov 24   ;;  %s146_s20 = smov 16   ;;  %v117_v15 = vld [vmem:[%s209_s0 + $0x1] sm:$0x1]   ;;  %vm27_vm4 = vcmask 851712   ;;  %vm33_vm5 = vcmask 786112  }
   0x9   :  { %s147_s0 = smov 8   ;;  %vm39_vm6 = vcmask 720512   ;;  %vm45_vm7 = vcmask 654912   ;;  %vm51_vm8 = vcmask 589312   ;;  %vm57_vm9 = vcmask 523712  }
   0xa   :  { %31 = vrot.lane.b32.xlu0 %v107_v4, %s137_s24  ;;  %37 = vrot.lane.b32.xlu1 %v108_v5, %s138_s25  ;;  %vm63_vm10 = vcmask 458112   ;;  %vm69_vm11 = vcmask 392512   ;;  %vm75_vm12 = vcmask 326912   ;;  %vm81_vm13 = vcmask 261312  }
   0xb   :  { %vm87_vm14 = vcmask 195712   ;;  %vm93_vm15 = vcmask 130112  }
   0xe   :  { %43 = vrot.lane.b32.xlu0 %v109_v7, %s139_s30  ;;  %49 = vrot.lane.b32.xlu1 %v110_v8, %s140_s2 }
  0x12   :  { %55 = vrot.lane.b32.xlu0 %v111_v9, %s141_s7  ;;  %61 = vrot.lane.b32.xlu1 %v112_v10, %s142_s8 }
  0x16   :  { %67 = vrot.lane.b32.xlu0 %v113_v11, %s143_s13  ;;  %73 = vrot.lane.b32.xlu1 %v114_v12, %s144_s14 }
  0x1a   :  { %79 = vrot.lane.b32.xlu0 %v115_v13, %s145_s19  ;;  %85 = vrot.lane.b32.xlu1 %v116_v14, %s146_s20 }
  0x1e   :  { %91 = vrot.lane.b32.xlu0 %v117_v15, %s147_s0 }
  0x74   :  { %v8_v16 = vpop.permute.xlu0 %7   ;;  %v20_v17 = vpop.permute.xlu1 %19  }
  0x75   :  { %10 = vst.msk [vmem:[#allocation0] sm:$0x1] %vm9_vm1, %v8_v16  }
  0x78   :  { %v14_v18 = vpop.permute.xlu0 %13   ;;  %v26_v19 = vpop.permute.xlu1 %25  }
  0x79   :  { %16 = vst.msk [vmem:[#allocation0] sm:$0x1] %vm15_vm2, %v14_v18  }
  0x7a   :  { %22 = vst.msk [vmem:[#allocation0] sm:$0x1] %vm21_vm3, %v20_v17  }
  0x7b   :  { %28 = vst.msk [vmem:[#allocation0] sm:$0x1] %vm27_vm4, %v26_v19  }
  0x7c   :  { %v32_v20 = vpop.permute.xlu0 %31   ;;  %v38_v21 = vpop.permute.xlu1 %37  }
  0x7d   :  { %34 = vst.msk [vmem:[#allocation0] sm:$0x1] %vm33_vm5, %v32_v20  }
  0x7e   :  { %40 = vst.msk [vmem:[#allocation0] sm:$0x1] %vm39_vm6, %v38_v21  }
  0x80   :  { %v44_v22 = vpop.permute.xlu0 %43   ;;  %v50_v23 = vpop.permute.xlu1 %49  }
  0x81   :  { %46 = vst.msk [vmem:[#allocation0] sm:$0x1] %vm45_vm7, %v44_v22  }
  0x82   :  { %52 = vst.msk [vmem:[#allocation0] sm:$0x1] %vm51_vm8, %v50_v23  }
  0x84   :  { %v56_v24 = vpop.permute.xlu0 %55   ;;  %v62_v25 = vpop.permute.xlu1 %61  }
  0x85   :  { %58 = vst.msk [vmem:[#allocation0] sm:$0x1] %vm57_vm9, %v56_v24  }
  0x86   :  { %64 = vst.msk [vmem:[#allocation0] sm:$0x1] %vm63_vm10, %v62_v25  }
  0x88   :  { %v68_v26 = vpop.permute.xlu0 %67   ;;  %v74_v27 = vpop.permute.xlu1 %73  }
  0x89   :  { %70 = vst.msk [vmem:[#allocation0] sm:$0x1] %vm69_vm11, %v68_v26  }
  0x8a   :  { %76 = vst.msk [vmem:[#allocation0] sm:$0x1] %vm75_vm12, %v74_v27  }
  0x8c   :  { %v80_v28 = vpop.permute.xlu0 %79   ;;  %v86_v29 = vpop.permute.xlu1 %85  }
  0x8d   :  { %82 = vst.msk [vmem:[#allocation0] sm:$0x1] %vm81_vm13, %v80_v28  }
  0x8e   :  { %88 = vst.msk [vmem:[#allocation0] sm:$0x1] %vm87_vm14, %v86_v29  }
  0x90   :  { %v92_v30 = vpop.permute.xlu0 %91  }
  0x91   :  { %94 = vst.msk [vmem:[#allocation0] sm:$0x1] %vm93_vm15, %v92_v30  }
  0x98   :  { %v99_v31 = vld [vmem:[#allocation0] sm:$0x1] }
  0x99   :  { %102 = vst [vmem:[%s210_s1] sm:$0x1] %v99_v31 }

// kernel: tile.18
= control target key start
LH: loop header
LB: loop body
LE: loop exit
PB: predicated region body
PF: predicated region fallthrough
CT: control target
= control target key end

     0   :  { %s28_s0 = inlined_call_operand.vmem [shape: f32[4], index: 0, kind: input, shape index: {}]   ;;  %s29_s1 = inlined_call_operand.vmem [shape: f32[16,4], index: 1, kind: output, shape index: {}]  }
   0x1   :  { %v4_v0 = vld [vmem:[%s28_s0] ss:$0 sm:$0xff] }
   0x2   :  { %5 = vst [vmem:[%s29_s1] sm:$0xff] %v4_v0  ;;  %8 = vst [vmem:[%s29_s1 + $0x8] sm:$0xff] %v4_v0 }

// kernel: tile.19
= control target key start
LH: loop header
LB: loop body
LE: loop exit
PB: predicated region body
PF: predicated region fallthrough
CT: control target
= control target key end

     0   :  { %s133_s10 = smov 60   ;;  %s134_s11 = smov 52   ;;  %vm3_vm0 = vcmask 31744   ;;  %vm9_vm1 = vcmask 523744   ;;  %vm15_vm2 = vcmask 490944   ;;  %vm21_vm3 = vcmask 458144   ;;  %s209_s0 = inlined_call_operand.vmem [shape: f32[16,4], index: 0, kind: input, shape index: {}]   ;;  %s210_s1 = inlined_call_operand.vmem [shape: f32[1,64], index: 1, kind: output, shape index: {}]  }
   0x1   :  { %v103_v0 = vld [vmem:[%s209_s0 + $0xf] sm:$0x1]   ;;  %v105_v1 = vld [vmem:[%s209_s0 + $0xd] sm:$0x1]   ;;  %v104_v2 = vld [vmem:[%s209_s0 + $0xe] sm:$0x1]  }
   0x2   :  { %7 = vrot.lane.b32.xlu0 %v103_v0, %s133_s10  ;;  %19 = vrot.lane.b32.xlu1 %v105_v1, %s134_s11  ;;  %v106_v3 = vld [vmem:[%s209_s0 + $0xc] sm:$0x1]   ;;  %s135_s16 = smov 56   ;;  %s136_s17 = smov 48   ;;  %v107_v4 = vld [vmem:[%s209_s0 + $0xb] sm:$0x1]  }
   0x3   :  { %v108_v5 = vld [vmem:[%s209_s0 + $0xa] sm:$0x1]   ;;  %v2_v6 = vld [vmem:[%s209_s0] sm:$0x1]   ;;  %s137_s24 = smov 44   ;;  %s138_s25 = smov 40  }
   0x4   :  { %4 = vst.msk [vmem:[#allocation0] sm:$0x1] %vm3_vm0, %v2_v6   ;;  %v109_v7 = vld [vmem:[%s209_s0 + $0x9] sm:$0x1]   ;;  %v110_v8 = vld [vmem:[%s209_s0 + $0x8] sm:$0x1]  }
   0x5   :  { %s139_s30 = smov 36   ;;  %s140_s2 = smov 32   ;;  %v111_v9 = vld [vmem:[%s209_s0 + $0x7] sm:$0x1]   ;;  %v112_v10 = vld [vmem:[%s209_s0 + $0x6] sm:$0x1]  }
   0x6   :  { %13 = vrot.lane.b32.xlu0 %v104_v2, %s135_s16  ;;  %25 = vrot.lane.b32.xlu1 %v106_v3, %s136_s17  ;;  %s141_s7 = smov 28   ;;  %s142_s8 = smov 24   ;;  %v113_v11 = vld [vmem:[%s209_s0 + $0x5] sm:$0x1]   ;;  %v114_v12 = vld [vmem:[%s209_s0 + $0x4] sm:$0x1]  }
   0x7   :  { %s143_s13 = smov 20   ;;  %s144_s14 = smov 16   ;;  %v115_v13 = vld [vmem:[%s209_s0 + $0x3] sm:$0x1]   ;;  %v116_v14 = vld [vmem:[%s209_s0 + $0x2] sm:$0x1]  }
   0x8   :  { %s145_s19 = smov 12   ;;  %s146_s20 = smov 8   ;;  %v117_v15 = vld [vmem:[%s209_s0 + $0x1] sm:$0x1]   ;;  %vm27_vm4 = vcmask 425344   ;;  %vm33_vm5 = vcmask 392544  }
   0x9   :  { %s147_s0 = smov 4   ;;  %vm39_vm6 = vcmask 359744   ;;  %vm45_vm7 = vcmask 326944   ;;  %vm51_vm8 = vcmask 294144   ;;  %vm57_vm9 = vcmask 261344  }
   0xa   :  { %31 = vrot.lane.b32.xlu0 %v107_v4, %s137_s24  ;;  %37 = vrot.lane.b32.xlu1 %v108_v5, %s138_s25  ;;  %vm63_vm10 = vcmask 228544   ;;  %vm69_vm11 = vcmask 195744   ;;  %vm75_vm12 = vcmask 162944   ;;  %vm81_vm13 = vcmask 130144  }
   0xb   :  { %vm87_vm14 = vcmask 97344   ;;  %vm93_vm15 = vcmask 64544  }
   0xe   :  { %43 = vrot.lane.b32.xlu0 %v109_v7, %s139_s30  ;;  %49 = vrot.lane.b32.xlu1 %v110_v8, %s140_s2 }
  0x12   :  { %55 = vrot.lane.b32.xlu0 %v111_v9, %s141_s7  ;;  %61 = vrot.lane.b32.xlu1 %v112_v10, %s142_s8 }
  0x16   :  { %67 = vrot.lane.b32.xlu0 %v113_v11, %s143_s13  ;;  %73 = vrot.lane.b32.xlu1 %v114_v12, %s144_s14 }
  0x1a   :  { %79 = vrot.lane.b32.xlu0 %v115_v13, %s145_s19  ;;  %85 = vrot.lane.b32.xlu1 %v116_v14, %s146_s20 }
  0x1e   :  { %91 = vrot.lane.b32.xlu0 %v117_v15, %s147_s0 }
  0x74   :  { %v8_v16 = vpop.permute.xlu0 %7   ;;  %v20_v17 = vpop.permute.xlu1 %19  }
  0x75   :  { %10 = vst.msk [vmem:[#allocation0] sm:$0x1] %vm9_vm1, %v8_v16  }
  0x78   :  { %v14_v18 = vpop.permute.xlu0 %13   ;;  %v26_v19 = vpop.permute.xlu1 %25  }
  0x79   :  { %16 = vst.msk [vmem:[#allocation0] sm:$0x1] %vm15_vm2, %v14_v18  }
  0x7a   :  { %22 = vst.msk [vmem:[#allocation0] sm:$0x1] %vm21_vm3, %v20_v17  }
  0x7b   :  { %28 = vst.msk [vmem:[#allocation0] sm:$0x1] %vm27_vm4, %v26_v19  }
  0x7c   :  { %v32_v20 = vpop.permute.xlu0 %31   ;;  %v38_v21 = vpop.permute.xlu1 %37  }
  0x7d   :  { %34 = vst.msk [vmem:[#allocation0] sm:$0x1] %vm33_vm5, %v32_v20  }
  0x7e   :  { %40 = vst.msk [vmem:[#allocation0] sm:$0x1] %vm39_vm6, %v38_v21  }
  0x80   :  { %v44_v22 = vpop.permute.xlu0 %43   ;;  %v50_v23 = vpop.permute.xlu1 %49  }
  0x81   :  { %46 = vst.msk [vmem:[#allocation0] sm:$0x1] %vm45_vm7, %v44_v22  }
  0x82   :  { %52 = vst.msk [vmem:[#allocation0] sm:$0x1] %vm51_vm8, %v50_v23  }
  0x84   :  { %v56_v24 = vpop.permute.xlu0 %55   ;;  %v62_v25 = vpop.permute.xlu1 %61  }
  0x85   :  { %58 = vst.msk [vmem:[#allocation0] sm:$0x1] %vm57_vm9, %v56_v24  }
  0x86   :  { %64 = vst.msk [vmem:[#allocation0] sm:$0x1] %vm63_vm10, %v62_v25  }
  0x88   :  { %v68_v26 = vpop.permute.xlu0 %67   ;;  %v74_v27 = vpop.permute.xlu1 %73  }
  0x89   :  { %70 = vst.msk [vmem:[#allocation0] sm:$0x1] %vm69_vm11, %v68_v26  }
  0x8a   :  { %76 = vst.msk [vmem:[#allocation0] sm:$0x1] %vm75_vm12, %v74_v27  }
  0x8c   :  { %v80_v28 = vpop.permute.xlu0 %79   ;;  %v86_v29 = vpop.permute.xlu1 %85  }
  0x8d   :  { %82 = vst.msk [vmem:[#allocation0] sm:$0x1] %vm81_vm13, %v80_v28  }
  0x8e   :  { %88 = vst.msk [vmem:[#allocation0] sm:$0x1] %vm87_vm14, %v86_v29  }
  0x90   :  { %v92_v30 = vpop.permute.xlu0 %91  }
  0x91   :  { %94 = vst.msk [vmem:[#allocation0] sm:$0x1] %vm93_vm15, %v92_v30  }
  0x98   :  { %v99_v31 = vld [vmem:[#allocation0] sm:$0x1] }
  0x99   :  { %102 = vst [vmem:[%s210_s1] sm:$0x1] %v99_v31 }

// kernel: res_block_forward.1
= control target key start
LH: loop header
LB: loop body
LE: loop exit
PB: predicated region body
PF: predicated region fallthrough
CT: control target
= control target key end

     0   :  { %s1616_s18 = smov 0   ;;  %s1906_s0 = inlined_call_operand.vmem [shape: f32[2,16,64], index: 0, kind: input, shape index: {}]   ;;  %s1907_s1 = inlined_call_operand.vmem [shape: f32[3,64,128], index: 1, kind: input, shape index: {}]   ;;  %s1908_s2 = inlined_call_operand.vmem [shape: f32[1,128], index: 2, kind: input, shape index: {}]   ;;  %s1909_s3 = inlined_call_operand.vmem [shape: f32[3,128,64], index: 3, kind: input, shape index: {}]   ;;  %s1910_s4 = inlined_call_operand.vmem [shape: f32[1,64], index: 4, kind: input, shape index: {}]   ;;  %s1911_s5 = inlined_call_operand.vmem [shape: f32[2,16,64], index: 5, kind: output, shape index: {}]  }
   0x1 LB: > { %s1195_s19 = sadd.s32 4294967295, %s1583_s18   ;;  %p1199_p0 = scmp.ge.s32.totalorder %s1583_s18, 1  ;;  %s1583_s18 = sphi %s1616_s18, %s15_s18  }
   0x2   : > { %p187_p1 = scmp.lt.s32.totalorder %s1583_s18, 3 }
   0x4   : > { %p188_p2 = pnand %p1199_p0, %p187_p1 }
   0x5   : > { %p215_p3 = scmp.lt.s32.totalorder (!%p188_p2), %s1195_s19, 1 }
   0x6   : > { %191 = sbr.rel (%p188_p2) target bundleno = 880 (0x370), region = 40 }
   0xb   : > { %v225_v0 = vlaneseq  ;;  %v419_v1 = vld [vmem:[%s1907_s1 + $0x38] sm:$0xff]  ;;  %v418_v2 = vld [vmem:[%s1907_s1 + $0x30] sm:$0xff]  ;;  %s1913_s19 = smov (!%p215_p3, %s1195_s19), 1  ;;  %v417_v5 = vld [vmem:[%s1907_s1 + $0x28] sm:$0xff]  ;;  %vm248_vm0 = vcmask 130048   ;;  %v1585_v14 = vmov 0.0  }
   0xc   : > { %1392 = vmatprep.subr.mxu0 %v419_v1  ;;  %s1276_s26 = sshll.u32 %s1913_s19, 4  ;;  %v416_v9 = vld [vmem:[%s1907_s1 + $0x20] sm:$0xff]  ;;  %v415_v16 = vld [vmem:[%s1907_s1 + $0x18] sm:$0xff]  ;;  %v414_v19 = vld [vmem:[%s1907_s1 + $0x10] sm:$0xff]  ;;  %vm420_vm5 = vcmask 523264  }
   0xd   : > { %v226_v3 = vshrl.u32 %v225_v0, 7  ;;  %v229_v4 = vand.u32 127, %v225_v0  ;;  %1393 = vmatpush3.msra.mxu0 %v419_v1  ;;  %s219_s6 = scalar_lea.vmem %s1906_s0, %s1276_s26  ;;  %v413_v21 = vld [vmem:[%s1907_s1 + $0x8] sm:$0xff]  ;;  %v412_v22 = vld [vmem:[%s1907_s1] sm:$0xff]  ;;  %v1224_v23 = vld [vmem:[%s1907_s1 + $0x78] sm:$0xff]  ;;  %s224_s17 = scalar_lea.vmem %s1911_s5, %s1276_s26 }
   0xe   : > { %1394 = vmatprep.subr.mxu0 %v418_v2  ;;  %v1644_v10 = vld [vmem:[%s219_s6 + $0x8] sm:$0xff]  ;;  %v1646_v11 = vld [vmem:[%s219_s6] sm:$0xff]  ;;  %v1223_v26 = vld [vmem:[%s1907_s1 + $0x70] sm:$0xff] }
   0xf   : > { %v1204_v6 = vadd.s32 4294967295, %v226_v3  ;;  %v227_v7 = vadd.s32 8, %v226_v3  ;;  %v238_v8 = vadd.s32 1, %v226_v3  ;;  %1395 = vmatpush3.msra.mxu0 %v418_v2  ;;  %1378 = vmatprep.subr.mxu1 %v1644_v10  ;;  %v1222_v27 = vld [vmem:[%s1907_s1 + $0x68] sm:$0xff]  ;;  %v1221_v28 = vld [vmem:[%s1907_s1 + $0x60] sm:$0xff]  ;;  %v1220_v29 = vld [vmem:[%s1907_s1 + $0x58] sm:$0xff] }
  0x10   : > { %1396 = vmatprep.subr.mxu0 %v417_v5  ;;  %1379 = vmatpush3.msra.mxu1 %v1644_v10  ;;  %v1219_v30 = vld [vmem:[%s1907_s1 + $0x50] sm:$0xff]  ;;  %v1218_v31 = vld [vmem:[%s1907_s1 + $0x48] sm:$0xff]  ;;  %v1217_v33 = vld [vmem:[%s1907_s1 + $0x40] sm:$0xff] }
  0x11   : > { %vm232_vm1 = vcmp.eq.s32.totalorder %v229_v4, %v1204_v6  ;;  %v1205_v12 = vadd.s32 4294967295, %v227_v7  ;;  %vm240_vm2 = vcmp.eq.s32.totalorder %v229_v4, %v238_v8  ;;  %v239_v13 = vadd.s32 1, %v227_v7  ;;  %1397 = vmatpush3.msra.mxu0 %v417_v5  ;;  %1380 = vmatprep.subr.mxu1 %v1646_v11  ;;  %v1234_v34 = vld [vmem:[%s1907_s1 + $0xb8] sm:$0xff]  ;;  %v1233_v36 = vld [vmem:[%s1907_s1 + $0xb0] sm:$0xff]  ;;  %v1232_v37 = vld [vmem:[%s1907_s1 + $0xa8] sm:$0xff] }
  0x12   : > { %v1206_v15 = vsel %vm232_vm1, 1.0, %v1585_v14  ;;  %1398 = vmatprep.subr.mxu0 %v416_v9  ;;  %v1657_v18 = vsel %vm240_vm2, 1.0, %v1585_v14  ;;  %1381 = vmatpush3.msra.mxu1 %v1646_v11  ;;  %v1231_v38 = vld [vmem:[%s1907_s1 + $0xa0] sm:$0xff]  ;;  %v1230_v39 = vld [vmem:[%s1907_s1 + $0x98] sm:$0xff]  ;;  %v1229_v40 = vld [vmem:[%s1907_s1 + $0x90] sm:$0xff] }
  0x13   : > { %1382 = vmatprep.mubr.msk.f32.mxu1 %vm248_vm0, %v1206_v15  ;;  %vm233_vm3 = vcmp.eq.s32.totalorder %v229_v4, %v1205_v12  ;;  %vm241_vm4 = vcmp.eq.s32.totalorder %v229_v4, %v239_v13  ;;  %1399 = vmatpush3.msra.mxu0 %v416_v9  ;;  %v1228_v41 = vld [vmem:[%s1907_s1 + $0x88] sm:$0xff]  ;;  %v1227_v42 = vld [vmem:[%s1907_s1 + $0x80] sm:$0xff]  ;;  %v1257_v43 = vld [vmem:[%s1909_s3 + $0xf8] sm:$0xff] }
  0x14   : > { %v1655_v17 = vsel %vm233_vm3, 1.0, %v1585_v14  ;;  %1400 = vmatprep.subr.mxu0 %v415_v16  ;;  %1385 = vmatprep.subr.mxu1 %v1644_v10  ;;  %v1669_v20 = vsel %vm241_vm4, 1.0, %v1585_v14  ;;  %v1256_v44 = vld [vmem:[%s1909_s3 + $0xf0] sm:$0xff]  ;;  %v1255_v45 = vld [vmem:[%s1909_s3 + $0xe8] sm:$0xff]  ;;  %v1254_v46 = vld [vmem:[%s1909_s3 + $0xe0] sm:$0xff] }
  0x15   : > { %1383 = vmatmul.mubr.msk.f32.vlgmr.msra.gmra.mxu1 %vm248_vm0, %v1655_v17  ;;  %1401 = vmatpush3.msra.mxu0 %v415_v16  ;;  %v1253_v47 = vld [vmem:[%s1909_s3 + $0xd8] sm:$0xff]  ;;  %v1252_v48 = vld [vmem:[%s1909_s3 + $0xd0] sm:$0xff]  ;;  %v1251_v49 = vld [vmem:[%s1909_s3 + $0xc8] sm:$0xff] }
  0x16   : > { %1386 = vmatpush3.msra.mxu1 %v1644_v10  ;;  %1389 = vmatprep.mubr.msk.f32.mxu1 %vm248_vm0, %v1657_v18  ;;  %v1250_v50 = vld [vmem:[%s1909_s3 + $0xc0] sm:$0xff]  ;;  %v1249_v51 = vld [vmem:[%s1909_s3 + $0xb8] sm:$0xff]  ;;  %v1248_v52 = vld [vmem:[%s1909_s3 + $0xb0] sm:$0xff] }
  0x17   : > { %1387 = vmatprep.subr.mxu1 %v1646_v11  ;;  %1402 = vmatprep.subr.mxu0 %v414_v19  ;;  %v1247_v53 = vld [vmem:[%s1909_s3 + $0xa8] sm:$0xff]  ;;  %v1246_v54 = vld [vmem:[%s1909_s3 + $0xa0] sm:$0xff]  ;;  %v1245_v55 = vld [vmem:[%s1909_s3 + $0x98] sm:$0xff] }
  0x18   : > { %1388 = vmatpush3.msra.mxu1 %v1646_v11  ;;  %1403 = vmatpush3.msra.mxu0 %v414_v19  ;;  %v1244_v56 = vld [vmem:[%s1909_s3 + $0x90] sm:$0xff]  ;;  %v1243_v57 = vld [vmem:[%s1909_s3 + $0x88] sm:$0xff]  ;;  %v1242_v58 = vld [vmem:[%s1909_s3 + $0x80] sm:$0xff] }
  0x19   : > { %1390 = vmatmul.mubr.msk.f32.vlgmr.msra.gmra.mxu1 %vm248_vm0, %v1669_v20  ;;  %1404 = vmatprep.subr.mxu0 %v413_v21  ;;  %v1216_v61 = vld [vmem:[%s1908_s2] ss:$0 sm:$0xff]  ;;  %v862_v12 = vld [vmem:[%s1909_s3 + $0x78] sm:$0xff]  ;;  %v861_v13 = vld [vmem:[%s1909_s3 + $0x70] sm:$0xff] }
  0x1a   : > { %1453 = vmatprep.mubr.msk.f32.mxu1 %vm248_vm0, %v1206_v15  ;;  %1405 = vmatpush3.msra.mxu0 %v413_v21  ;;  %v860_v14 = vld [vmem:[%s1909_s3 + $0x68] sm:$0xff]  ;;  %v859_v15 = vld [vmem:[%s1909_s3 + $0x60] sm:$0xff]  ;;  %v858_v16 = vld [vmem:[%s1909_s3 + $0x58] sm:$0xff] }
  0x1b   : > { %1406 = vmatprep.subr.mxu0 %v412_v22  ;;  %v855_v19 = vld [vmem:[%s1909_s3 + $0x40] sm:$0xff]  ;;  %v853_v21 = vld [vmem:[%s1909_s3 + $0x30] sm:$0xff] }
  0x1c   : > { %1407 = vmatpush3.msra.mxu0 %v412_v22  ;;  %v852_v22 = vld [vmem:[%s1909_s3 + $0x28] sm:$0xff] }
  0x1d   : > { %1411 = vmatprep.subr.mxu0 %v1224_v23 }
  0xd5   : > { %v1384_v24 = vpop.f32.mrf.mxu1 }
  0xd7   : > { %v321_v25 = vpop.f32.mrf.mxu1 }
  0xd8   : > { %1408 = vmatprep.mubr.msk.f32.mxu0 %vm420_vm5, %v321_v25  ;;  %v849_v25 = vld [vmem:[%s1909_s3 + $0x10] sm:$0xff] }
  0xd9   : > { %1409 = vmatmul.mubr.msk.f32.vlgmr.msra.gmra.mxu0 %vm420_vm5, %v1384_v24  ;;  %v1391_v32 = vpop.f32.mrf.mxu1  ;;  %v850_v24 = vld [vmem:[%s1909_s3 + $0x18] sm:$0xff] }
  0xda   : > { %1412 = vmatpush3.msra.mxu0 %v1224_v23  ;;  %1427 = vmatprep.mubr.msk.f32.mxu0 %vm420_vm5, %v1646_v11  ;;  %v851_v23 = vld [vmem:[%s1909_s3 + $0x20] sm:$0xff] }
  0xdb   : > { %1413 = vmatprep.subr.mxu0 %v1223_v26  ;;  %v402_v35 = vpop.f32.mrf.mxu1 }
  0xdc   : > { %1414 = vmatpush3.msra.mxu0 %v1223_v26  ;;  %v848_v26 = vld [vmem:[%s1909_s3 + $0x8] sm:$0xff] }
  0xdd   : > { %1415 = vmatprep.subr.mxu0 %v1222_v27 }
  0xde   : > { %1416 = vmatpush3.msra.mxu0 %v1222_v27  ;;  %v847_v27 = vld [vmem:[%s1909_s3] sm:$0xff] }
  0xdf   : > { %1417 = vmatprep.subr.mxu0 %v1221_v28 }
  0xe0   : > { %1418 = vmatpush3.msra.mxu0 %v1221_v28  ;;  %v1273_v28 = vld [vmem:[%s1909_s3 + $0x178] sm:$0xff] }
  0xe1   : > { %1419 = vmatprep.subr.mxu0 %v1220_v29 }
  0xe2   : > { %1420 = vmatpush3.msra.mxu0 %v1220_v29 }
  0xe3   : > { %1421 = vmatprep.subr.mxu0 %v1219_v30 }
  0xe4   : > { %1422 = vmatpush3.msra.mxu0 %v1219_v30 }
  0xe5   : > { %1423 = vmatprep.subr.mxu0 %v1218_v31 }
  0xe6   : > { %1424 = vmatpush3.msra.mxu0 %v1218_v31  ;;  %v1272_v31 = vld [vmem:[%s1909_s3 + $0x170] sm:$0xff] }
  0xe7   : > { %1425 = vmatprep.subr.mxu0 %v1217_v33 }
  0xe8   : > { %1426 = vmatpush3.msra.mxu0 %v1217_v33  ;;  %v1271_v33 = vld [vmem:[%s1909_s3 + $0x168] sm:$0xff] }
  0xe9   : > { %1428 = vmatmul.mubr.msk.f32.vlgmr.msra.gmra.mxu0 %vm420_vm5, %v1644_v10  ;;  %1430 = vmatprep.subr.mxu0 %v1234_v34 }
  0xea   : > { %1431 = vmatpush3.msra.mxu0 %v1234_v34  ;;  %1446 = vmatprep.mubr.msk.f32.mxu0 %vm420_vm5, %v402_v35  ;;  %v1270_v35 = vld [vmem:[%s1909_s3 + $0x160] sm:$0xff] }
  0xeb   : > { %1432 = vmatprep.subr.mxu0 %v1233_v36 }
  0xec   : > { %1433 = vmatpush3.msra.mxu0 %v1233_v36  ;;  %v1269_v36 = vld [vmem:[%s1909_s3 + $0x158] sm:$0xff] }
  0xed   : > { %1434 = vmatprep.subr.mxu0 %v1232_v37 }
  0xee   : > { %1435 = vmatpush3.msra.mxu0 %v1232_v37  ;;  %v1268_v37 = vld [vmem:[%s1909_s3 + $0x150] sm:$0xff] }
  0xef   : > { %1436 = vmatprep.subr.mxu0 %v1231_v38 }
  0xf0   : > { %1437 = vmatpush3.msra.mxu0 %v1231_v38  ;;  %v1267_v38 = vld [vmem:[%s1909_s3 + $0x148] sm:$0xff] }
  0xf1   : > { %1438 = vmatprep.subr.mxu0 %v1230_v39 }
  0xf2   : > { %1439 = vmatpush3.msra.mxu0 %v1230_v39  ;;  %v1266_v39 = vld [vmem:[%s1909_s3 + $0x140] sm:$0xff] }
  0xf3   : > { %1440 = vmatprep.subr.mxu0 %v1229_v40 }
  0xf4   : > { %1441 = vmatpush3.msra.mxu0 %v1229_v40  ;;  %v1265_v40 = vld [vmem:[%s1909_s3 + $0x138] sm:$0xff] }
  0xf5   : > { %1442 = vmatprep.subr.mxu0 %v1228_v41 }
  0xf6   : > { %1443 = vmatpush3.msra.mxu0 %v1228_v41  ;;  %v1264_v41 = vld [vmem:[%s1909_s3 + $0x130] sm:$0xff] }
  0xf7   : > { %1444 = vmatprep.subr.mxu0 %v1227_v42 }
  0xf8   : > { %1445 = vmatpush3.msra.mxu0 %v1227_v42  ;;  %v1263_v42 = vld [vmem:[%s1909_s3 + $0x128] sm:$0xff] }
  0xf9   : > { %1447 = vmatmul.mubr.msk.f32.vlgmr.msra.gmra.mxu0 %vm420_vm5, %v1391_v32  ;;  %1498 = vmatprep.subr.mxu0 %v1257_v43 }
  0xfa   : > { %1499 = vmatpush3.msra.mxu0 %v1257_v43  ;;  %v1262_v43 = vld [vmem:[%s1909_s3 + $0x120] sm:$0xff] }
  0xfb   : > { %1500 = vmatprep.subr.mxu0 %v1256_v44 }
  0xfc   : > { %1501 = vmatpush3.msra.mxu0 %v1256_v44  ;;  %v1261_v44 = vld [vmem:[%s1909_s3 + $0x118] sm:$0xff] }
  0xfd   : > { %1502 = vmatprep.subr.mxu0 %v1255_v45 }
  0xfe   : > { %1503 = vmatpush3.msra.mxu0 %v1255_v45  ;;  %v1260_v45 = vld [vmem:[%s1909_s3 + $0x110] sm:$0xff] }
  0xff   : > { %1504 = vmatprep.subr.mxu0 %v1254_v46 }
 0x100   : > { %1505 = vmatpush3.msra.mxu0 %v1254_v46  ;;  %v1259_v46 = vld [vmem:[%s1909_s3 + $0x108] sm:$0xff] }
 0x101   : > { %1506 = vmatprep.subr.mxu0 %v1253_v47 }
 0x102   : > { %1507 = vmatpush3.msra.mxu0 %v1253_v47  ;;  %v1258_v47 = vld [vmem:[%s1909_s3 + $0x100] sm:$0xff] }
 0x103   : > { %1508 = vmatprep.subr.mxu0 %v1252_v48 }
 0x104   : > { %1509 = vmatpush3.msra.mxu0 %v1252_v48 }
 0x105   : > { %1510 = vmatprep.subr.mxu0 %v1251_v49 }
 0x106   : > { %1511 = vmatpush3.msra.mxu0 %v1251_v49  ;;  %v1241_v49 = vld [vmem:[%s1910_s4] ss:$0 sm:$0xff] }
 0x107   : > { %1512 = vmatprep.subr.mxu0 %v1250_v50 }
 0x108   : > { %1513 = vmatpush3.msra.mxu0 %v1250_v50 }
 0x109   : > { %1514 = vmatprep.subr.mxu0 %v1249_v51 }
 0x10a   : > { %1515 = vmatpush3.msra.mxu0 %v1249_v51 }
 0x10b   : > { %1516 = vmatprep.subr.mxu0 %v1248_v52 }
 0x10c   : > { %1517 = vmatpush3.msra.mxu0 %v1248_v52 }
 0x10d   : > { %1518 = vmatprep.subr.mxu0 %v1247_v53 }
 0x10e   : > { %1519 = vmatpush3.msra.mxu0 %v1247_v53 }
 0x10f   : > { %1520 = vmatprep.subr.mxu0 %v1246_v54 }
 0x110   : > { %1521 = vmatpush3.msra.mxu0 %v1246_v54 }
 0x111   : > { %1522 = vmatprep.subr.mxu0 %v1245_v55 }
 0x112   : > { %1523 = vmatpush3.msra.mxu0 %v1245_v55 }
 0x113   : > { %1524 = vmatprep.subr.mxu0 %v1244_v56 }
 0x114   : > { %1525 = vmatpush3.msra.mxu0 %v1244_v56 }
 0x115   : > { %1526 = vmatprep.subr.mxu0 %v1243_v57 }
 0x116   : > { %1527 = vmatpush3.msra.mxu0 %v1243_v57 }
 0x117   : > { %1528 = vmatprep.subr.mxu0 %v1242_v58 }
 0x118   : > { %1529 = vmatpush3.msra.mxu0 %v1242_v58 }
 0x199   : > { %v1410_v59 = vpop.f32.mrf.mxu0 }
 0x19a   : > { %v509_v63 = vadd.f32 %v1410_v59, %v1216_v61 }
 0x19b   : > { %v493_v60 = vpop.f32.mrf.mxu0 }
 0x19c   : > { %v508_v1 = vadd.f32 %v1216_v61, %v493_v60 }
 0x1a9   : > { %v1429_v62 = vpop.f32.mrf.mxu0 }
 0x1aa   : > { %v601_v2 = vadd.f32 %v1429_v62, %v509_v63 }
 0x1ab   : > { %v591_v0 = vpop.f32.mrf.mxu0 }
 0x1ac   : > { %v600_v4 = vadd.f32 %v591_v0, %v508_v1 }
 0x1b9   : > { %v1448_v3 = vpop.f32.mrf.mxu0 }
 0x1ba   : > { %v693_v5 = vadd.f32 %v1448_v3, %v601_v2 }
 0x1bb   : > { %v683_v6 = vpop.f32.mrf.mxu0 }
 0x1bc   : > { %v695_v7 = vmax.f32 %v693_v5, 0.0  ;;  %v692_v8 = vadd.f32 %v683_v6, %v600_v4 }
 0x1be   : > { %v694_v9 = vmax.f32 %v692_v8, 0.0  ;;  %1449 = vmatprep.subr.mxu1 %v695_v7 }
 0x1bf   : > { %1450 = vmatpush3.msra.mxu1 %v695_v7 }
 0x1c0   : > { %1451 = vmatprep.subr.mxu1 %v694_v9  ;;  %1530 = vmatprep.mubr.f32.mxu0 %v694_v9 }
 0x1c1   : > { %1452 = vmatpush3.msra.mxu1 %v694_v9  ;;  %1531 = vmatmul.mubr.f32.vlgmr.msra.gmra.mxu0 %v695_v7 }
 0x1c2   : > { %1454 = vmatmul.mubr.msk.f32.vlgmr.msra.gmra.mxu1 %vm248_vm0, %v1655_v17  ;;  %1456 = vmatprep.subr.mxu1 %v695_v7  ;;  %v857_v17 = vld [vmem:[%s1909_s3 + $0x50] sm:$0xff] }
 0x1c3   : > { %1457 = vmatpush3.msra.mxu1 %v695_v7  ;;  %1460 = vmatprep.mubr.msk.f32.mxu1 %vm248_vm0, %v1657_v18  ;;  %v856_v18 = vld [vmem:[%s1909_s3 + $0x48] sm:$0xff] }
 0x1c4   : > { %1458 = vmatprep.subr.mxu1 %v694_v9 }
 0x1c5   : > { %1459 = vmatpush3.msra.mxu1 %v694_v9 }
 0x1c6   : > { %1461 = vmatmul.mubr.msk.f32.vlgmr.msra.gmra.mxu1 %vm248_vm0, %v1669_v20  ;;  %1463 = vmatprep.subr.mxu1 %v862_v12  ;;  %v854_v20 = vld [vmem:[%s1909_s3 + $0x38] sm:$0xff] }
 0x1c7   : > { %1464 = vmatpush3.msra.mxu1 %v862_v12 }
 0x1c8   : > { %1465 = vmatprep.subr.mxu1 %v861_v13 }
 0x1c9   : > { %1466 = vmatpush3.msra.mxu1 %v861_v13 }
 0x1ca   : > { %1467 = vmatprep.subr.mxu1 %v860_v14 }
 0x1cb   : > { %1468 = vmatpush3.msra.mxu1 %v860_v14 }
 0x1cc   : > { %1469 = vmatprep.subr.mxu1 %v859_v15 }
 0x1cd   : > { %1470 = vmatpush3.msra.mxu1 %v859_v15 }
 0x1ce   : > { %1471 = vmatprep.subr.mxu1 %v858_v16 }
 0x1cf   : > { %1472 = vmatpush3.msra.mxu1 %v858_v16 }
 0x1d0   : > { %1473 = vmatprep.subr.mxu1 %v857_v17 }
 0x1d1   : > { %1474 = vmatpush3.msra.mxu1 %v857_v17 }
 0x1d2   : > { %1475 = vmatprep.subr.mxu1 %v856_v18 }
 0x1d3   : > { %1476 = vmatpush3.msra.mxu1 %v856_v18 }
 0x1d4   : > { %1477 = vmatprep.subr.mxu1 %v855_v19 }
 0x1d5   : > { %1478 = vmatpush3.msra.mxu1 %v855_v19 }
 0x1d6   : > { %1479 = vmatprep.subr.mxu1 %v854_v20 }
 0x1d7   : > { %1480 = vmatpush3.msra.mxu1 %v854_v20 }
 0x1d8   : > { %1481 = vmatprep.subr.mxu1 %v853_v21 }
 0x1d9   : > { %1482 = vmatpush3.msra.mxu1 %v853_v21 }
 0x1da   : > { %1483 = vmatprep.subr.mxu1 %v852_v22 }
 0x1db   : > { %1484 = vmatpush3.msra.mxu1 %v852_v22 }
 0x1dc   : > { %1485 = vmatprep.subr.mxu1 %v851_v23 }
 0x1dd   : > { %1486 = vmatpush3.msra.mxu1 %v851_v23 }
 0x1de   : > { %1487 = vmatprep.subr.mxu1 %v850_v24 }
 0x1df   : > { %1488 = vmatpush3.msra.mxu1 %v850_v24 }
 0x1e0   : > { %1489 = vmatprep.subr.mxu1 %v849_v25 }
 0x1e1   : > { %1490 = vmatpush3.msra.mxu1 %v849_v25 }
 0x1e2   : > { %1491 = vmatprep.subr.mxu1 %v848_v26 }
 0x1e3   : > { %1492 = vmatpush3.msra.mxu1 %v848_v26 }
 0x1e4   : > { %1493 = vmatprep.subr.mxu1 %v847_v27 }
 0x1e5   : > { %1494 = vmatpush3.msra.mxu1 %v847_v27 }
 0x1e6   : > { %1533 = vmatprep.subr.mxu1 %v1273_v28 }
 0x281   : > { %v1532_v52 = vpop.f32.mrf.mxu0 }
 0x282   : > { %v1455_v29 = vpop.f32.mrf.mxu1 }
 0x283   : > { %v1029_v55 = vpop.f32.mrf.mxu0 }
 0x284   : > { %v762_v30 = vpop.f32.mrf.mxu1 }
 0x285   : > { %1495 = vmatprep.mubr.f32.mxu1 %v762_v30 }
 0x286   : > { %1496 = vmatmul.mubr.f32.vlgmr.msra.gmra.mxu1 %v1455_v29  ;;  %v1462_v32 = vpop.f32.mrf.mxu1 }
 0x287   : > { %1534 = vmatpush3.msra.mxu1 %v1273_v28 }
 0x288   : > { %1535 = vmatprep.subr.mxu1 %v1272_v31  ;;  %v837_v34 = vpop.f32.mrf.mxu1 }
 0x289   : > { %1536 = vmatpush3.msra.mxu1 %v1272_v31  ;;  %1565 = vmatprep.mubr.f32.mxu1 %v837_v34 }
 0x28a   : > { %1537 = vmatprep.subr.mxu1 %v1271_v33 }
 0x28b   : > { %1538 = vmatpush3.msra.mxu1 %v1271_v33 }
 0x28c   : > { %1539 = vmatprep.subr.mxu1 %v1270_v35 }
 0x28d   : > { %1540 = vmatpush3.msra.mxu1 %v1270_v35 }
 0x28e   : > { %1541 = vmatprep.subr.mxu1 %v1269_v36 }
 0x28f   : > { %1542 = vmatpush3.msra.mxu1 %v1269_v36 }
 0x290   : > { %1543 = vmatprep.subr.mxu1 %v1268_v37 }
 0x291   : > { %1544 = vmatpush3.msra.mxu1 %v1268_v37 }
 0x292   : > { %1545 = vmatprep.subr.mxu1 %v1267_v38 }
 0x293   : > { %1546 = vmatpush3.msra.mxu1 %v1267_v38 }
 0x294   : > { %1547 = vmatprep.subr.mxu1 %v1266_v39 }
 0x295   : > { %1548 = vmatpush3.msra.mxu1 %v1266_v39 }
 0x296   : > { %1549 = vmatprep.subr.mxu1 %v1265_v40 }
 0x297   : > { %1550 = vmatpush3.msra.mxu1 %v1265_v40 }
 0x298   : > { %1551 = vmatprep.subr.mxu1 %v1264_v41 }
 0x299   : > { %1552 = vmatpush3.msra.mxu1 %v1264_v41 }
 0x29a   : > { %1553 = vmatprep.subr.mxu1 %v1263_v42 }
 0x29b   : > { %1554 = vmatpush3.msra.mxu1 %v1263_v42 }
 0x29c   : > { %1555 = vmatprep.subr.mxu1 %v1262_v43 }
 0x29d   : > { %1556 = vmatpush3.msra.mxu1 %v1262_v43 }
 0x29e   : > { %1557 = vmatprep.subr.mxu1 %v1261_v44 }
 0x29f   : > { %1558 = vmatpush3.msra.mxu1 %v1261_v44 }
 0x2a0   : > { %1559 = vmatprep.subr.mxu1 %v1260_v45 }
 0x2a1   : > { %1560 = vmatpush3.msra.mxu1 %v1260_v45 }
 0x2a2   : > { %1561 = vmatprep.subr.mxu1 %v1259_v46 }
 0x2a3   : > { %1562 = vmatpush3.msra.mxu1 %v1259_v46 }
 0x2a4   : > { %1563 = vmatprep.subr.mxu1 %v1258_v47 }
 0x2a5   : > { %1564 = vmatpush3.msra.mxu1 %v1258_v47 }
 0x2a6   : > { %1566 = vmatmul.mubr.f32.vlgmr.msra.gmra.mxu1 %v1462_v32 }
 0x346   : > { %v1497_v48 = vpop.f32.mrf.mxu1 }
 0x347   : > { %v945_v51 = vadd.f32 %v1497_v48, %v1241_v49 }
 0x348   : > { %v929_v50 = vpop.f32.mrf.mxu1 }
 0x349   : > { %v944_v53 = vadd.f32 %v1241_v49, %v929_v50  ;;  %v1039_v54 = vadd.f32 %v1532_v52, %v945_v51 }
 0x34b   : > { %v1038_v58 = vadd.f32 %v1029_v55, %v944_v53 }
 0x366   : > { %v1567_v56 = vpop.f32.mrf.mxu1 }
 0x367   : > { %v1133_v57 = vadd.f32 %v1567_v56, %v1039_v54 }
 0x368   : > { %v1123_v59 = vpop.f32.mrf.mxu1 }
 0x369   : > { %v1135_v60 = vadd.f32 %v1133_v57, %v1644_v10  ;;  %v1132_v61 = vadd.f32 %v1123_v59, %v1038_v58 }
 0x36b   : > { %v1137_v62 = vmax.f32 %v1135_v60, 0.0  ;;  %v1134_v63 = vadd.f32 %v1132_v61, %v1646_v11 }
 0x36d   : > { %1139 = vst.msk [vmem:[%s224_s17 + $0x8] sm:$0xff] %vm420_vm5, %v1137_v62  ;;  %v1136_v0 = vmax.f32 %v1134_v63, 0.0 }
 0x36f   : > { %1138 = vst.msk [vmem:[%s224_s17] sm:$0xff] %vm420_vm5, %v1136_v0 }
 0x370 PF: > { %s15_s18 = sadd.s32 1, %s1583_s18  }
 0x371   : > { %p12_p4 = scmp.ge.s32.totalorder %s15_s18, 4  }
 0x373   :  { %14 = sbr.rel (!%p12_p4) target bundleno = 1 (0x1), region = 74 }

</bundles_post_ra>
